<compile_context>
chip_gen: v5e
topology: v5e:2x2
jax: 0.10.0
libtpu: 0.0.40
codegen_flags: <defaults>
</compile_context>

<pallas_src>
import functools

import jax
import jax.numpy as jnp
from jax.experimental import pallas as pl
from jax.experimental.pallas import tpu as pltpu


def _round_up(n: int, m: int) -> int:
    return ((n + m - 1) // m) * m


def _simam_kernel(x_ref, o_ref, *, e_lambda: float, inv_n: float, valid_lanes):
    # x_ref block: (block_rows, hw_block) in VMEM
    x = x_ref[...].astype(jnp.float32)

    if valid_lanes is not None:
        # Lane axis was rounded up to a multiple of 128 for dense vector
        # stores; zero the padded lanes so the per-row sums stay exact.
        lane = jax.lax.broadcasted_iota(jnp.int32, x.shape, dimension=x.ndim - 1)
        x = jnp.where(lane < valid_lanes, x, 0.0)

    # Single-pass fused statistics per (b, c) row.
    s1 = jnp.sum(x, axis=-1, keepdims=True)        # (rows, 1)
    s2 = jnp.sum(x * x, axis=-1, keepdims=True)    # (rows, 1)
    mu = s1 * inv_n
    var = jnp.maximum(s2 * inv_n - mu * mu, 0.0)   # biased variance, clamped

    # 1 / (4*(var + e_lambda)) on the tiny (rows, 1) column: EUP vrcp + one
    # Newton-Raphson refinement (negligible cost, restores ~exact accuracy).
    denom = 4.0 * (var + e_lambda)
    inv = pl.reciprocal(denom, approx=True)
    inv = inv * (2.0 - denom * inv)

    d = x - mu
    energy = d * d * inv + 0.5
    o_ref[...] = (x * jax.nn.sigmoid(energy)).astype(o_ref.dtype)


def simam(x: jax.Array, e_lambda: float = 1e-4, block_rows: int | None = None) -> jax.Array:
    """SimAM forward. x is NCHW (matching the PyTorch module)."""
    b, c, h, w = x.shape
    bc, hw = b * c, h * w
    hw_block = _round_up(hw, 128)          # lane-dense block width
    x2d = x.reshape(bc, hw)                # layout-preserving, free

    if block_rows is None:
        # ~1 MiB input block: measured Pallas data shows ~85% of HBM roofline
        # at this tile size; in+out double buffers (4 blocks) stay well under
        # v5e's 16 MiB scoped default and v6e/v7x limits.
        target_bytes = 1 << 20
        bytes_per_row = hw_block * x.dtype.itemsize
        block_rows = max(8, (target_bytes // max(bytes_per_row, 1)) // 8 * 8)
        block_rows = min(block_rows, _round_up(bc, 8))
        # Prefer >= 2 grid steps (pipelining + both v7x TCs) when there is work.
        if pl.cdiv(bc, block_rows) == 1 and bc > 8:
            block_rows = _round_up(pl.cdiv(bc, 2), 8)
    assert block_rows % 8 == 0, "block_rows must be a multiple of 8 (sublane tiling)"

    grid = (pl.cdiv(bc, block_rows),)      # ragged tail handled by Pallas OOB semantics
    spec = pl.BlockSpec((block_rows, hw_block), lambda i: (i, 0))

    kernel = functools.partial(
        _simam_kernel,
        e_lambda=float(e_lambda),
        inv_n=1.0 / float(hw),
        valid_lanes=None if hw_block == hw else hw,
    )

    out2d = pl.pallas_call(
        kernel,
        out_shape=jax.ShapeDtypeStruct((bc, hw), x.dtype),
        grid=grid,
        in_specs=[spec],
        out_specs=spec,
        compiler_params=pltpu.CompilerParams(
            dimension_semantics=("parallel",),          # row blocks are independent
            vmem_limit_bytes=32 * 1024 * 1024,          # safe on v5e/v6e/v7x, ample headroom
        ),
    )(x2d)

    return out2d.reshape(b, c, h, w)


def _simam_ref(x: jax.Array, e_lambda: float = 1e-4) -> jax.Array:
    """Pure-JAX reference mirroring the PyTorch module."""
    mu = jnp.mean(x, axis=(2, 3), keepdims=True)
    var = jnp.mean((x - mu) ** 2, axis=(2, 3), keepdims=True)
    energy = (x - mu) ** 2 / (4.0 * (var + e_lambda)) + 0.5
    return x * jax.nn.sigmoid(energy)


if __name__ == "__main__":
    key = jax.random.PRNGKey(0)
    # batch=2, channels=4, spatial=16x16 (SimAM is parameter-free)
    x = jax.random.normal(key, (2, 4, 16, 16), dtype=jnp.float32)

    out = simam(x, e_lambda=1e-4)
    out = jax.block_until_ready(out)

    ref = _simam_ref(x, e_lambda=1e-4)
    assert out.shape == x.shape and out.dtype == x.dtype
    assert jnp.allclose(out, ref, atol=1e-4, rtol=1e-4), "mismatch vs JAX reference"

    print("KERNEL_OK")
</pallas_src>

<mosaic_0001>
module attributes {stable_mosaic.version = 11 : i64} {
  func.func @_simam_kernel(%arg0: i32, %arg1: memref<8x256xf32, #tpu.memory_space<vmem>>, %arg2: memref<8x256xf32, #tpu.memory_space<vmem>>) attributes {dimension_semantics = [#tpu.dimension_semantics<parallel>], iteration_bounds = array<i64: 1>, scalar_prefetch = 0 : i64, scratch_operands = 0 : i64, tpu.core_type = #tpu.core_type<tc>, window_params = [{transform_indices = @transform_0, window_bounds = array<i64: 8, 256>}, {transform_indices = @transform_1, window_bounds = array<i64: 8, 256>}]} {
    %c0 = arith.constant 0 : index
    %c0_0 = arith.constant 0 : index
    %0 = vector.load %arg1[%c0, %c0_0] : memref<8x256xf32, #tpu.memory_space<vmem>>, vector<8x256xf32>
    %cst = arith.constant dense<0.000000e+00> : vector<8xf32>
    %1 = vector.multi_reduction <add>, %0, %cst [1] : vector<8x256xf32> to vector<8xf32>
    %2 = vector.shape_cast %1 : vector<8xf32> to vector<8x1xf32>
    %3 = arith.mulf %0, %0 : vector<8x256xf32>
    %cst_1 = arith.constant dense<0.000000e+00> : vector<8xf32>
    %4 = vector.multi_reduction <add>, %3, %cst_1 [1] : vector<8x256xf32> to vector<8xf32>
    %5 = vector.shape_cast %4 : vector<8xf32> to vector<8x1xf32>
    %cst_2 = arith.constant 3.906250e-03 : f32
    %6 = vector.broadcast %cst_2 : f32 to vector<8x1xf32>
    %7 = arith.mulf %2, %6 : vector<8x1xf32>
    %cst_3 = arith.constant 3.906250e-03 : f32
    %8 = vector.broadcast %cst_3 : f32 to vector<8x1xf32>
    %9 = arith.mulf %5, %8 : vector<8x1xf32>
    %10 = arith.mulf %7, %7 : vector<8x1xf32>
    %11 = arith.subf %9, %10 : vector<8x1xf32>
    %cst_4 = arith.constant 0.000000e+00 : f32
    %12 = vector.broadcast %cst_4 : f32 to vector<8x1xf32>
    %13 = arith.maximumf %11, %12 : vector<8x1xf32>
    %cst_5 = arith.constant 9.99999974E-5 : f32
    %14 = vector.broadcast %cst_5 : f32 to vector<8x1xf32>
    %15 = arith.addf %13, %14 : vector<8x1xf32>
    %cst_6 = arith.constant 4.000000e+00 : f32
    %16 = vector.broadcast %cst_6 : f32 to vector<8x1xf32>
    %17 = arith.mulf %16, %15 : vector<8x1xf32>
    %18 = tpu.reciprocal %17 {approx = true} : vector<8x1xf32> -> vector<8x1xf32>
    %19 = arith.mulf %17, %18 : vector<8x1xf32>
    %cst_7 = arith.constant 2.000000e+00 : f32
    %20 = vector.broadcast %cst_7 : f32 to vector<8x1xf32>
    %21 = arith.subf %20, %19 : vector<8x1xf32>
    %22 = arith.mulf %18, %21 : vector<8x1xf32>
    %23 = vector.broadcast %7 : vector<8x1xf32> to vector<8x256xf32>
    %24 = arith.subf %0, %23 : vector<8x256xf32>
    %25 = arith.mulf %24, %24 : vector<8x256xf32>
    %26 = vector.broadcast %22 : vector<8x1xf32> to vector<8x256xf32>
    %27 = arith.mulf %25, %26 : vector<8x256xf32>
    %cst_8 = arith.constant 5.000000e-01 : f32
    %28 = vector.broadcast %cst_8 : f32 to vector<8x256xf32>
    %29 = arith.addf %27, %28 : vector<8x256xf32>
    %30 = arith.negf %29 : vector<8x256xf32>
    %31 = math.exp %30 : vector<8x256xf32>
    %cst_9 = arith.constant 1.000000e+00 : f32
    %32 = vector.broadcast %cst_9 : f32 to vector<8x256xf32>
    %33 = arith.addf %32, %31 : vector<8x256xf32>
    %34 = arith.divf %32, %33 : vector<8x256xf32>
    %35 = arith.mulf %0, %34 : vector<8x256xf32>
    %c0_10 = arith.constant 0 : index
    %c0_11 = arith.constant 0 : index
    %36 = vector.load %arg2[%c0_10, %c0_11] : memref<8x256xf32, #tpu.memory_space<vmem>>, vector<8x256xf32>
    tpu.vector_store %arg2[%c0_10, %c0_11], %35 {strides = array<i32>} : memref<8x256xf32, #tpu.memory_space<vmem>>, vector<8x256xf32>,
    return
  }
  func.func @transform_0(%arg0: i32) -> (i32, i32) {
    %c0_i32 = arith.constant 0 : i32
    %c0_i32_0 = arith.constant 0 : i32
    return %arg0, %c0_i32 : i32, i32
  }
  func.func @transform_1(%arg0: i32) -> (i32, i32) {
    %c0_i32 = arith.constant 0 : i32
    %c0_i32_0 = arith.constant 0 : i32
    return %arg0, %c0_i32 : i32, i32
  }
}

</mosaic_0001>

<bundles_post_ra>
// kernel: tpu_custom_call.1
= control target key start
LH: loop header
LB: loop body
LE: loop exit
PB: predicated region body
PF: predicated region fallthrough
CT: control target
= control target key end

     0   :  { %6 = vsyncpa [#allocation3], 0  ;;  %s209_s0 = inlined_call_operand.hbm [shape: f32[8,256], index: 0, kind: input, shape index: {}]   ;;  %s210_s1 = inlined_call_operand.hbm [shape: f32[8,256], index: 1, kind: output, shape index: {}]  }
   0x1   :  { %7 = vsyncpa [#allocation4], 0  ;;  %s13_s8 = sshll.u32 %s209_s0, 4  ;;  %s177_s9 = smov [#allocation2]   ;;  %s14_s8 = int_to_ptr.hbm [resolvable:$true] %s13_s8 }
   0x2   :  { %s15_s10 = sshll.u32 %s177_s9, 4  ;;  %s16_s10 = int_to_ptr.vmem [resolvable:$true] %s15_s10 }
   0x3   :  { %18 = dma.hbm_to_vmem [thread:$0]  %s14_s8, 256, %s16_s10, [#allocation3]  }
   0x4   :  { %173 = dma.done.wait [#allocation3], 256  }
   0x5   :  { %174 = vsyncadd [#allocation3], 4294967040  ;;  %v192_v0 = vld [vmem:[#allocation2] sm:$0xff]  ;;  %v194_v1 = vld [vmem:[#allocation2 + $0x8] sm:$0xff]  ;;  %s178_s0 = smov [#allocation5]   ;;  %s101_s14 = sshll.u32 %s210_s1, 4  ;;  %s102_s14 = int_to_ptr.hbm [resolvable:$true] %s101_s14 }
   0x6   :  { %v25_v2 = vadd.f32 %v194_v1, %v192_v0  ;;  %v28_v3 = vmul.f32 %v192_v0, %v192_v0  ;;  %v29_v4 = vmul.f32 %v194_v1, %v194_v1  ;;  %s99_s11 = sshll.u32 %s178_s0, 4  ;;  %s100_s11 = int_to_ptr.vmem [resolvable:$true] %s99_s11 }
   0x8   :  { %26 = vadd.xlane.f32.xlu0 %v25_v2  ;;  %v30_v5 = vadd.f32 %v29_v4, %v28_v3 }
  0x10   :  { %31 = vadd.xlane.f32.xlu0 %v30_v5 }
  0x7b   :  { %v27_v6 = vpop.xlane.xlu0 %26 }
  0x7c   :  { %v33_v7 = vmul.f32 0.00390625, %v27_v6 }
  0x7e   :  { %v35_v9 = vmul.f32 %v33_v7, %v33_v7  ;;  %v44_v16 = vsub.f32 %v192_v0, %v33_v7  ;;  %v45_v17 = vsub.f32 %v194_v1, %v33_v7 }
  0x80   :  { %v46_v20 = vmul.f32 %v44_v16, %v44_v16  ;;  %v47_v21 = vmul.f32 %v45_v17, %v45_v17 }
  0x83   :  { %v32_v8 = vpop.xlane.xlu0 %31 }
  0x84   :  { %v34_v10 = vmul.f32 0.00390625, %v32_v8 }
  0x86   :  { %v36_v11 = vsub.f32 %v34_v10, %v35_v9 }
  0x88   :  { %v37_v12 = vmax.f32 %v36_v11, 0.0 }
  0x8a   :  { %v38_v13 = vadd.f32 0.0001, %v37_v12 }
  0x8c   :  { %v39_v14 = vmul.f32 4.0, %v38_v13 }
  0x8e   :  { %115 = vrcp.f32 %v39_v14 }
  0x94   :  { %v116_v15 = vpop.eup %115 }
  0x95   :  { %v41_v18 = vmul.f32 %v116_v15, %v39_v14 }
  0x97   :  { %v42_v19 = vsub.f32 2.0, %v41_v18 }
  0x99   :  { %v43_v22 = vmul.f32 %v116_v15, %v42_v19 }
  0x9b   :  { %v48_v23 = vmul.f32 %v46_v20, %v43_v22  ;;  %v49_v24 = vmul.f32 %v47_v21, %v43_v22 }
  0x9d   :  { %v50_v25 = vadd.f32 0.5, %v48_v23  ;;  %v51_v26 = vadd.f32 0.5, %v49_v24 }
  0x9f   :  { %v111_v27 = vmul.f32 -1.442695, %v50_v25  ;;  %v112_v28 = vmul.f32 -1.442695, %v51_v26 }
  0xa1   :  { %117 = vpow2.f32 %v111_v27 }
  0xa2   :  { %119 = vpow2.f32 %v112_v28 }
  0xa7   :  { %v118_v29 = vpop.eup %117 }
  0xa8   :  { %v120_v30 = vpop.eup %119  ;;  %v58_v31 = vadd.f32 1.0, %v118_v29 }
  0xa9   :  { %v59_v32 = vadd.f32 1.0, %v120_v30 }
  0xaa   :  { %121 = vrcp.f32 %v58_v31  ;;  %v71_v38 = vand.u32 2147483648, %v58_v31  ;;  %v69_v41 = vand.u32 2147483647, %v58_v31  ;;  %vm65_vm2 = vweird.f32 %v58_v31 }
  0xab   :  { %123 = vrcp.f32 %v59_v32  ;;  %v86_v42 = vand.u32 2147483648, %v59_v32  ;;  %v84_v44 = vand.u32 2147483647, %v59_v32  ;;  %vm80_vm4 = vweird.f32 %v59_v32 }
  0xac   :  { %v72_v46 = vor.u32 1.1754944e-38, %v71_v38  ;;  %vm70_vm5 = vcmp.eq.f32.partialorder %v69_v41, 8.507059e+37 }
  0xad   :  { %v87_v49 = vor.u32 1.1754944e-38, %v86_v42  ;;  %vm85_vm7 = vcmp.eq.f32.partialorder %v84_v44, 8.507059e+37 }
  0xb0   :  { %v122_v33 = vpop.eup %121 }
  0xb1   :  { %v124_v34 = vpop.eup %123  ;;  %v61_v35 = vmul.f32 %v122_v33, %v58_v31  ;;  %vm66_vm0 = vweird.f32 %v122_v33 }
  0xb2   :  { %v76_v36 = vmul.f32 %v124_v34, %v59_v32  ;;  %vm81_vm1 = vweird.f32 %v124_v34  ;;  %vm67_vm3 = vmor %vm65_vm2, %vm66_vm0 }
  0xb3   :  { %v62_v37 = vsub.f32 1.0, %v61_v35  ;;  %vm82_vm6 = vmor %vm80_vm4, %vm81_vm1 }
  0xb4   :  { %v77_v39 = vsub.f32 1.0, %v76_v36 }
  0xb5   :  { %v63_v40 = vmul.f32 %v122_v33, %v62_v37 }
  0xb6   :  { %v78_v43 = vmul.f32 %v124_v34, %v77_v39 }
  0xb7   :  { %v64_v45 = vadd.f32 %v122_v33, %v63_v40 }
  0xb8   :  { %v79_v47 = vadd.f32 %v124_v34, %v78_v43 }
  0xb9   :  { %v68_v48 = vsel %vm67_vm3, %v122_v33, %v64_v45 }
  0xba   :  { %v73_v50 = vsel %vm70_vm5, %v72_v46, %v68_v48  ;;  %v83_v51 = vsel %vm82_vm6, %v124_v34, %v79_v47 }
  0xbb   :  { %v88_v52 = vsel %vm85_vm7, %v87_v49, %v83_v51  ;;  %v90_v53 = vmul.f32 %v73_v50, %v192_v0 }
  0xbc   :  { %v91_v54 = vmul.f32 %v88_v52, %v194_v1 }
  0xbd   :  { %92 = vst [vmem:[#allocation5] sm:$0xff] %v90_v53 }
  0xbe   :  { %93 = vst [vmem:[#allocation5 + $0x8] sm:$0xff] %v91_v54 }
  0xbf   :  { %104 = dma.vmem_to_hbm [thread:$0]  %s100_s11, 256, %s102_s14, [#allocation4]  }
  0xc0   :  { %175 = dma.done.wait [#allocation4], 256  }
  0xc1   :  { %176 = vsyncadd [#allocation4], 4294967040 }
  0xc2   :  { %109 = vsyncpa [#allocation3], 1 }
  0xc3   :  { %110 = vsyncpa [#allocation4], 1 }

</bundles_post_ra>
